<compile_context>
chip_gen: v7x
topology: tpu7x:2x2x1
jax: 0.10.0
libtpu: 0.0.40
codegen_flags: <defaults>
</compile_context>

<pallas_src>
import jax
import jax.numpy as jnp
from jax import lax
from jax.experimental import pallas as pl
from jax.experimental.pallas import tpu as pltpu

D_IN, D_H1, D_H2, D_OUT = 228, 256, 128, 30
TB_MAX = 2048      # max batch-tile rows per grid step
CHUNK = 512        # in-kernel sub-chunk rows (keeps intermediates small)


def _round_up(n, m):
    return ((n + m - 1) // m) * m


def _batch_tile(B):
    """Rows per grid step: large enough to amortize per-step overhead, but always
    >= 2 grid steps once B > 32 so v7x's two TensorCores both get work."""
    if B <= 32:
        return B                                  # single block; block dim == full array dim
    return min(TB_MAX, _round_up(pl.cdiv(B, 2), 16))


def _make_kernel(tb):
    n_full, rem = divmod(tb, CHUNK)

    def kernel(x_ref, w1_ref, b1_ref, w2_ref, b2_ref, w3_ref, b3_ref, o_ref):
        # Hoist bias loads out of the sub-chunk loop.
        b1 = b1_ref[...]
        b2 = b2_ref[...]
        b3 = b3_ref[...]

        def run_rows(r0, rows):
            # fc1 + ReLU (bf16 MXU feed, f32 accumulation; K = 228, no zero pad)
            xc = x_ref[pl.ds(r0, rows), :].astype(jnp.bfloat16)
            h1 = jnp.dot(xc, w1_ref[...], preferred_element_type=jnp.float32)
            h1 = jnp.maximum(h1 + b1, 0.0)
            # fc2 + ReLU
            h2 = jnp.dot(h1.astype(jnp.bfloat16), w2_ref[...],
                         preferred_element_type=jnp.float32)
            h2 = jnp.maximum(h2 + b2, 0.0)
            # fc3 (no activation); 30-lane masked store -- store slot has slack here
            out = jnp.dot(h2.astype(jnp.bfloat16), w3_ref[...],
                          preferred_element_type=jnp.float32) + b3
            o_ref[pl.ds(r0, rows), :] = out.astype(o_ref.dtype)

        if n_full > 0:
            def body(c, carry):
                run_rows(pl.multiple_of(c * CHUNK, CHUNK), CHUNK)
                return carry
            lax.fori_loop(0, n_full, body, 0, unroll=True)
        if rem > 0:
            run_rows(n_full * CHUNK, rem)

    return kernel


def _prepare_params(params):
    """Cast matmul operands to bf16 (f32 accumulation on the MXU); biases stay f32."""
    w1, b1, w2, b2, w3, b3 = params
    return (w1.astype(jnp.bfloat16), b1.astype(jnp.float32),
            w2.astype(jnp.bfloat16), b2.astype(jnp.float32),
            w3.astype(jnp.bfloat16), b3.astype(jnp.float32))


@jax.jit
def embedding_net_forward(x, params):
    """x: (B, 228) float. Returns (B, 30) float32 (same semantics as EmbeddingNet.forward)."""
    if x.dtype not in (jnp.float32, jnp.bfloat16):
        x = x.astype(jnp.float32)                 # mirror the module's x.float()

    B = x.shape[0]
    w1, b1, w2, b2, w3, b3 = _prepare_params(params)
    tb = _batch_tile(B)

    resident = lambda shape: pl.BlockSpec(shape, lambda i, s=shape: (0,) * len(s))
    # NOTE: pipeline_mode=pl.Buffered(1) on the resident specs would shave ~0.25 MiB
    # of double-buffer VMEM; skipped since VMEM has ample headroom at tb<=2048.

    return pl.pallas_call(
        _make_kernel(tb),
        out_shape=jax.ShapeDtypeStruct((B, D_OUT), jnp.float32),
        grid=(pl.cdiv(B, tb),),
        in_specs=[
            pl.BlockSpec((tb, D_IN), lambda i: (i, 0)),            # x: batch-tiled
            resident((D_IN, D_H1)), resident((1, D_H1)),           # fc1 (VMEM-resident)
            resident((D_H1, D_H2)), resident((1, D_H2)),           # fc2
            resident((D_H2, D_OUT)), resident((1, D_OUT)),         # fc3
        ],
        out_specs=pl.BlockSpec((tb, D_OUT), lambda i: (i, 0)),
        compiler_params=pltpu.CompilerParams(
            dimension_semantics=("parallel",)),
    )(x, w1, b1, w2, b2, w3, b3)


def init_params(key):
    """Deterministic init matching nn.Linear's default U(-1/sqrt(fan_in), 1/sqrt(fan_in))."""
    keys = jax.random.split(key, 6)

    def linear(kw, kb, fan_in, fan_out):
        bound = 1.0 / jnp.sqrt(float(fan_in))
        w = jax.random.uniform(kw, (fan_in, fan_out), jnp.float32, -bound, bound)
        b = jax.random.uniform(kb, (1, fan_out), jnp.float32, -bound, bound)
        return w, b

    w1, b1 = linear(keys[0], keys[1], D_IN, D_H1)
    w2, b2 = linear(keys[2], keys[3], D_H1, D_H2)
    w3, b3 = linear(keys[4], keys[5], D_H2, D_OUT)
    return (w1, b1, w2, b2, w3, b3)


def _reference_bf16(x, params):
    """Reference using the same bf16 matmul feeds / f32 accumulation as the kernel."""
    w1, b1, w2, b2, w3, b3 = params
    xb = x.astype(jnp.bfloat16)
    r = jnp.maximum(jnp.dot(xb, w1.astype(jnp.bfloat16),
                            preferred_element_type=jnp.float32) + b1, 0.0)
    r = jnp.maximum(jnp.dot(r.astype(jnp.bfloat16), w2.astype(jnp.bfloat16),
                            preferred_element_type=jnp.float32) + b2, 0.0)
    return jnp.dot(r.astype(jnp.bfloat16), w3.astype(jnp.bfloat16),
                   preferred_element_type=jnp.float32) + b3


def _reference_f32(x, params):
    w1, b1, w2, b2, w3, b3 = params
    r = jnp.maximum(x @ w1 + b1, 0.0)
    r = jnp.maximum(r @ w2 + b2, 0.0)
    return r @ w3 + b3


if __name__ == "__main__":
    key = jax.random.PRNGKey(0)
    k_param, k_x, k_x2 = jax.random.split(key, 3)

    params = init_params(k_param)

    # Small single-block case.
    B = 8
    x = jax.random.normal(k_x, (B, D_IN), jnp.float32)
    out = embedding_net_forward(x, params)
    jax.block_until_ready(out)
    assert out.shape == (B, D_OUT)
    assert jnp.allclose(out, _reference_bf16(x, params), atol=1e-2, rtol=1e-2)
    assert jnp.allclose(out, _reference_f32(x, params), atol=5e-2, rtol=5e-2)

    # Multi-step grid with a ragged tail block (exercises both-TC / partial-block path).
    B2 = 100
    x2 = jax.random.normal(k_x2, (B2, D_IN), jnp.float32)
    out2 = embedding_net_forward(x2, params)
    jax.block_until_ready(out2)
    assert out2.shape == (B2, D_OUT)
    assert jnp.allclose(out2, _reference_bf16(x2, params), atol=1e-2, rtol=1e-2)
    assert jnp.allclose(out2, _reference_f32(x2, params), atol=5e-2, rtol=5e-2)

    print("KERNEL_OK")
</pallas_src>

<mosaic_0001>
module attributes {stable_mosaic.version = 11 : i64} {
  func.func @kernel(%arg0: i32, %arg1: memref<8x228xf32, #tpu.memory_space<vmem>>, %arg2: memref<228x256xbf16, #tpu.memory_space<vmem>>, %arg3: memref<1x256xf32, #tpu.memory_space<vmem>>, %arg4: memref<256x128xbf16, #tpu.memory_space<vmem>>, %arg5: memref<1x128xf32, #tpu.memory_space<vmem>>, %arg6: memref<128x30xbf16, #tpu.memory_space<vmem>>, %arg7: memref<1x30xf32, #tpu.memory_space<vmem>>, %arg8: memref<8x30xf32, #tpu.memory_space<vmem>>) attributes {dimension_semantics = [#tpu.dimension_semantics<parallel>], iteration_bounds = array<i64: 1>, scalar_prefetch = 0 : i64, scratch_operands = 0 : i64, tpu.core_type = #tpu.core_type<tc>, window_params = [{transform_indices = @transform_0, window_bounds = array<i64: 8, 228>}, {pipeline_mode = #tpu.pipeline_mode<synchronous>, transform_indices = @transform_1, window_bounds = array<i64: 228, 256>}, {pipeline_mode = #tpu.pipeline_mode<synchronous>, transform_indices = @transform_2, window_bounds = array<i64: 1, 256>}, {pipeline_mode = #tpu.pipeline_mode<synchronous>, transform_indices = @transform_3, window_bounds = array<i64: 256, 128>}, {pipeline_mode = #tpu.pipeline_mode<synchronous>, transform_indices = @transform_4, window_bounds = array<i64: 1, 128>}, {pipeline_mode = #tpu.pipeline_mode<synchronous>, transform_indices = @transform_5, window_bounds = array<i64: 128, 30>}, {pipeline_mode = #tpu.pipeline_mode<synchronous>, transform_indices = @transform_6, window_bounds = array<i64: 1, 30>}, {transform_indices = @transform_7, window_bounds = array<i64: 8, 30>}]} {
    %c0 = arith.constant 0 : index
    %c0_0 = arith.constant 0 : index
    %0 = vector.load %arg3[%c0, %c0_0] : memref<1x256xf32, #tpu.memory_space<vmem>>, vector<1x256xf32>
    %c0_1 = arith.constant 0 : index
    %c0_2 = arith.constant 0 : index
    %1 = vector.load %arg5[%c0_1, %c0_2] : memref<1x128xf32, #tpu.memory_space<vmem>>, vector<1x128xf32>
    %c0_3 = arith.constant 0 : index
    %c0_4 = arith.constant 0 : index
    %2 = vector.load %arg7[%c0_3, %c0_4] : memref<1x30xf32, #tpu.memory_space<vmem>>, vector<1x30xf32>
    %c0_5 = arith.constant 0 : index
    %c0_6 = arith.constant 0 : index
    %3 = vector.load %arg1[%c0_5, %c0_6] : memref<8x228xf32, #tpu.memory_space<vmem>>, vector<8x228xf32>
    %4 = arith.truncf %3 : vector<8x228xf32> to vector<8x228xbf16>
    %c0_7 = arith.constant 0 : index
    %c0_8 = arith.constant 0 : index
    %5 = vector.load %arg2[%c0_7, %c0_8] : memref<228x256xbf16, #tpu.memory_space<vmem>>, vector<228x256xbf16>
    %cst = arith.constant dense<0.000000e+00> : vector<8x256xf32>
    %6 = tpu.matmul %4, %5, %cst {dimension_numbers = #tpu.dot_dimension_numbers<[1], [0], [0], [1], [0, 0, 1, 1], [], []>} : vector<8x228xbf16>, vector<228x256xbf16>, vector<8x256xf32> -> vector<8x256xf32>
    %7 = vector.broadcast %0 : vector<1x256xf32> to vector<8x256xf32>
    %8 = arith.addf %6, %7 : vector<8x256xf32>
    %cst_9 = arith.constant 0.000000e+00 : f32
    %9 = vector.broadcast %cst_9 : f32 to vector<8x256xf32>
    %10 = arith.maximumf %8, %9 : vector<8x256xf32>
    %11 = arith.truncf %10 : vector<8x256xf32> to vector<8x256xbf16>
    %c0_10 = arith.constant 0 : index
    %c0_11 = arith.constant 0 : index
    %12 = vector.load %arg4[%c0_10, %c0_11] : memref<256x128xbf16, #tpu.memory_space<vmem>>, vector<256x128xbf16>
    %cst_12 = arith.constant dense<0.000000e+00> : vector<8x128xf32>
    %13 = tpu.matmul %11, %12, %cst_12 {dimension_numbers = #tpu.dot_dimension_numbers<[1], [0], [0], [1], [0, 0, 1, 1], [], []>} : vector<8x256xbf16>, vector<256x128xbf16>, vector<8x128xf32> -> vector<8x128xf32>
    %14 = vector.broadcast %1 : vector<1x128xf32> to vector<8x128xf32>
    %15 = arith.addf %13, %14 : vector<8x128xf32>
    %cst_13 = arith.constant 0.000000e+00 : f32
    %16 = vector.broadcast %cst_13 : f32 to vector<8x128xf32>
    %17 = arith.maximumf %15, %16 : vector<8x128xf32>
    %18 = arith.truncf %17 : vector<8x128xf32> to vector<8x128xbf16>
    %c0_14 = arith.constant 0 : index
    %c0_15 = arith.constant 0 : index
    %19 = vector.load %arg6[%c0_14, %c0_15] : memref<128x30xbf16, #tpu.memory_space<vmem>>, vector<128x30xbf16>
    %cst_16 = arith.constant dense<0.000000e+00> : vector<8x30xf32>
    %20 = tpu.matmul %18, %19, %cst_16 {dimension_numbers = #tpu.dot_dimension_numbers<[1], [0], [0], [1], [0, 0, 1, 1], [], []>} : vector<8x128xbf16>, vector<128x30xbf16>, vector<8x30xf32> -> vector<8x30xf32>
    %21 = vector.broadcast %2 : vector<1x30xf32> to vector<8x30xf32>
    %22 = arith.addf %20, %21 : vector<8x30xf32>
    %c0_17 = arith.constant 0 : index
    %c0_18 = arith.constant 0 : index
    %23 = vector.load %arg8[%c0_17, %c0_18] : memref<8x30xf32, #tpu.memory_space<vmem>>, vector<8x30xf32>
    tpu.vector_store %arg8[%c0_17, %c0_18], %22 {strides = array<i32>} : memref<8x30xf32, #tpu.memory_space<vmem>>, vector<8x30xf32>,
    return
  }
  func.func @transform_0(%arg0: i32) -> (i32, i32) {
    %c0_i32 = arith.constant 0 : i32
    %c0_i32_0 = arith.constant 0 : i32
    return %arg0, %c0_i32 : i32, i32
  }
  func.func @transform_1(%arg0: i32) -> (i32, i32) {
    %c0_i32 = arith.constant 0 : i32
    %c0_i32_0 = arith.constant 0 : i32
    %c0_i32_1 = arith.constant 0 : i32
    return %c0_i32, %c0_i32_0 : i32, i32
  }
  func.func @transform_2(%arg0: i32) -> (i32, i32) {
    %c0_i32 = arith.constant 0 : i32
    %c0_i32_0 = arith.constant 0 : i32
    %c0_i32_1 = arith.constant 0 : i32
    return %c0_i32, %c0_i32_0 : i32, i32
  }
  func.func @transform_3(%arg0: i32) -> (i32, i32) {
    %c0_i32 = arith.constant 0 : i32
    %c0_i32_0 = arith.constant 0 : i32
    %c0_i32_1 = arith.constant 0 : i32
    return %c0_i32, %c0_i32_0 : i32, i32
  }
  func.func @transform_4(%arg0: i32) -> (i32, i32) {
    %c0_i32 = arith.constant 0 : i32
    %c0_i32_0 = arith.constant 0 : i32
    %c0_i32_1 = arith.constant 0 : i32
    return %c0_i32, %c0_i32_0 : i32, i32
  }
  func.func @transform_5(%arg0: i32) -> (i32, i32) {
    %c0_i32 = arith.constant 0 : i32
    %c0_i32_0 = arith.constant 0 : i32
    %c0_i32_1 = arith.constant 0 : i32
    return %c0_i32, %c0_i32_0 : i32, i32
  }
  func.func @transform_6(%arg0: i32) -> (i32, i32) {
    %c0_i32 = arith.constant 0 : i32
    %c0_i32_0 = arith.constant 0 : i32
    %c0_i32_1 = arith.constant 0 : i32
    return %c0_i32, %c0_i32_0 : i32, i32
  }
  func.func @transform_7(%arg0: i32) -> (i32, i32) {
    %c0_i32 = arith.constant 0 : i32
    %c0_i32_0 = arith.constant 0 : i32
    return %arg0, %c0_i32 : i32, i32
  }
}

</mosaic_0001>

<bundles_post_ra>
// kernel: embedding_net_forward.1
= control target key start
LH: loop header
LB: loop body
LE: loop exit
PB: predicated region body
PF: predicated region fallthrough
CT: control target
= control target key end

     0   :  { %vm220_vm0 = vcmask 818176   ;;  %s1011_s0 = inlined_call_operand.vmem [shape: f32[8,228], index: 0, kind: input, shape index: {}]   ;;  %s1012_s1 = inlined_call_operand.vmem [shape: bf16[228,256], index: 1, kind: input, shape index: {}]   ;;  %s1013_s2 = inlined_call_operand.vmem [shape: f32[1,256], index: 2, kind: input, shape index: {}]   ;;  %s1014_s3 = inlined_call_operand.vmem [shape: bf16[256,128], index: 3, kind: input, shape index: {}]   ;;  %s1015_s4 = inlined_call_operand.vmem [shape: f32[1,128], index: 4, kind: input, shape index: {}]   ;;  %s1016_s5 = inlined_call_operand.vmem [shape: bf16[128,30], index: 5, kind: input, shape index: {}]   ;;  %s1017_s6 = inlined_call_operand.vmem [shape: f32[1,30], index: 6, kind: input, shape index: {}]   ;;  %s1018_s7 = inlined_call_operand.hbm [shape: f32[8,30], index: 7, kind: output, shape index: {}]  }
   0x1   :  { %v690_v0 = vld [vmem:[%s1012_s1 + $0x4] ss:$8 sps:$4 sm:$0xff]   ;;  %v692_v1 = vld [vmem:[%s1012_s1] ss:$8 sps:$4 sm:$0xff]   ;;  %v693_v2 = vld [vmem:[%s1012_s1 + $0x14] ss:$8 sps:$4 sm:$0xff]  }
   0x2   :  { %231 = vmatprep.subr.bf16.mxu0 %v690_v0  ;;  %v695_v3 = vld [vmem:[%s1012_s1 + $0x10] ss:$8 sps:$4 sm:$0xff]   ;;  %v696_v4 = vld [vmem:[%s1012_s1 + $0x24] ss:$8 sps:$4 sm:$0xff]   ;;  %v698_v5 = vld [vmem:[%s1012_s1 + $0x20] ss:$8 sps:$4 sm:$0xff]  }
   0x3   :  { %232 = vmatpush1.bf16.msra.mxu0 %v692_v1  ;;  %v699_v6 = vld [vmem:[%s1012_s1 + $0x34] ss:$8 sps:$4 sm:$0xff]   ;;  %v701_v7 = vld [vmem:[%s1012_s1 + $0x30] ss:$8 sps:$4 sm:$0xff]   ;;  %v702_v8 = vld [vmem:[%s1012_s1 + $0x44] ss:$8 sps:$4 sm:$0xff]  }
   0x4   :  { %233 = vmatprep.subr.bf16.mxu0 %v693_v2  ;;  %v704_v9 = vld [vmem:[%s1012_s1 + $0x40] ss:$8 sps:$4 sm:$0xff]   ;;  %v705_v10 = vld [vmem:[%s1012_s1 + $0x54] ss:$8 sps:$4 sm:$0xff]   ;;  %v707_v11 = vld [vmem:[%s1012_s1 + $0x50] ss:$8 sps:$4 sm:$0xff]  }
   0x5   :  { %v708_v12 = vld [vmem:[%s1012_s1 + $0x64] ss:$8 sps:$4 sm:$0xff]   ;;  %v710_v16 = vld [vmem:[%s1012_s1 + $0x60] ss:$8 sps:$4 sm:$0xff]   ;;  %v711_v18 = vld [vmem:[%s1012_s1 + $0x74] ss:$8 sps:$4 sm:$0xff]  }
   0x6   :  { %v32_v13 = vld [vmem:[%s1011_s0 + $0x8] sm:$0xff]  ;;  %v734_v15 = vld [vmem:[%s1014_s3 + $0x40] sm:$0xff]   ;;  %v738_v21 = vld [vmem:[%s1014_s3 + $0x50] sm:$0xff]  }
   0x7   :  { %234 = vmatpush1.bf16.msra.mxu0 %v695_v3  ;;  %v34_v14 = vpack.c.bf16 %v32_v13, %v32_v13  ;;  %v735_v17 = vld [vmem:[%s1014_s3] sm:$0xff]   ;;  %636 = vmatprep.subr.bf16.mxu1 %v734_v15  ;;  %v736_v19 = vld [vmem:[%s1014_s3 + $0x48] sm:$0xff]   ;;  %v713_v22 = vld [vmem:[%s1012_s1 + $0x70] ss:$8 sps:$4 sm:$0xff]  }
   0x8   :  { %235 = vmatprep.subr.bf16.mxu0 %v696_v4  ;;  %637 = vmatpush3.bf16.msra.mxu1 %v735_v17  ;;  %v737_v20 = vld [vmem:[%s1014_s3 + $0x8] sm:$0xff]   ;;  %v739_v24 = vld [vmem:[%s1014_s3 + $0x10] sm:$0xff]   ;;  %v740_v25 = vld [vmem:[%s1014_s3 + $0x58] sm:$0xff]  }
   0x9   :  { %609 = vmatprep.mubr.msk.bf16.mxu0 %vm220_vm0, %v34_v14  ;;  %638 = vmatprep.subr.bf16.mxu1 %v736_v19  ;;  %v714_v23 = vld [vmem:[%s1012_s1 + $0x84] ss:$8 sps:$4 sm:$0xff]   ;;  %v716_v26 = vld [vmem:[%s1012_s1 + $0x80] ss:$8 sps:$4 sm:$0xff]   ;;  %v717_v27 = vld [vmem:[%s1012_s1 + $0x94] ss:$8 sps:$4 sm:$0xff]  }
   0xa   :  { %v741_v28 = vld [vmem:[%s1014_s3 + $0x18] sm:$0xff]   ;;  %v742_v29 = vld [vmem:[%s1014_s3 + $0x60] sm:$0xff]   ;;  %v744_v33 = vld [vmem:[%s1014_s3 + $0x68] sm:$0xff]  }
   0xb   :  { %236 = vmatpush1.bf16.msra.mxu0 %v698_v5  ;;  %v719_v30 = vld [vmem:[%s1012_s1 + $0x90] ss:$8 sps:$4 sm:$0xff]   ;;  %v743_v31 = vld [vmem:[%s1014_s3 + $0x20] sm:$0xff]   ;;  %v745_v35 = vld [vmem:[%s1014_s3 + $0x28] sm:$0xff]  }
   0xc   :  { %237 = vmatprep.subr.bf16.mxu0 %v699_v6  ;;  %639 = vmatpush3.bf16.msra.mxu1 %v737_v20  ;;  %v720_v32 = vld [vmem:[%s1012_s1 + $0xa4] ss:$8 sps:$4 sm:$0xff]   ;;  %v722_v34 = vld [vmem:[%s1012_s1 + $0xa0] ss:$8 sps:$4 sm:$0xff]   ;;  %v723_v36 = vld [vmem:[%s1012_s1 + $0xb4] ss:$8 sps:$4 sm:$0xff]  }
   0xd   :  { %640 = vmatprep.subr.bf16.mxu1 %v738_v21 }
   0xf   :  { %238 = vmatpush1.bf16.msra.mxu0 %v701_v7 }
  0x10   :  { %239 = vmatprep.subr.bf16.mxu0 %v702_v8  ;;  %641 = vmatpush3.bf16.msra.mxu1 %v739_v24 }
  0x11   :  { %642 = vmatprep.subr.bf16.mxu1 %v740_v25 }
  0x13   :  { %240 = vmatpush1.bf16.msra.mxu0 %v704_v9 }
  0x14   :  { %241 = vmatprep.subr.bf16.mxu0 %v705_v10  ;;  %643 = vmatpush3.bf16.msra.mxu1 %v741_v28 }
  0x15   :  { %644 = vmatprep.subr.bf16.mxu1 %v742_v29 }
  0x17   :  { %242 = vmatpush1.bf16.msra.mxu0 %v707_v11 }
  0x18   :  { %243 = vmatprep.subr.bf16.mxu0 %v708_v12  ;;  %645 = vmatpush3.bf16.msra.mxu1 %v743_v31 }
  0x19   :  { %646 = vmatprep.subr.bf16.mxu1 %v744_v33 }
  0x1b   :  { %244 = vmatpush1.bf16.msra.mxu0 %v710_v16 }
  0x1c   :  { %245 = vmatprep.subr.bf16.mxu0 %v711_v18 }
  0x1f   :  { %246 = vmatpush1.bf16.msra.mxu0 %v713_v22 }
  0x20   :  { %247 = vmatprep.subr.bf16.mxu0 %v714_v23 }
  0x23   :  { %248 = vmatpush1.bf16.msra.mxu0 %v716_v26 }
  0x24   :  { %249 = vmatprep.subr.bf16.mxu0 %v717_v27 }
  0x27   :  { %250 = vmatpush1.bf16.msra.mxu0 %v719_v30 }
  0x28   :  { %251 = vmatprep.subr.bf16.mxu0 %v720_v32 }
  0x29   :  { %12 = vsyncpa [#allocation3], 0  ;;  %v725_v37 = vld [vmem:[%s1012_s1 + $0xb0] ss:$8 sps:$4 sm:$0xff]   ;;  %647 = vmatpush3.bf16.msra.mxu1 %v745_v35  ;;  %v726_v38 = vld [vmem:[%s1012_s1 + $0xc4] ss:$8 sps:$4 sm:$0xff]   ;;  %v65_v53 = vlaneseq }
  0x2a   :  { %v728_v39 = vld [vmem:[%s1012_s1 + $0xc0] ss:$8 sps:$4 sm:$0xff]   ;;  %v729_v40 = vld [vmem:[%s1012_s1 + $0xd4] ss:$8 sps:$4 sm:$0xff]   ;;  %v731_v42 = vld [vmem:[%s1012_s1 + $0xd0] ss:$8 sps:$4 sm:$0xff]  }
  0x2b   :  { %252 = vmatpush1.bf16.msra.mxu0 %v722_v34  ;;  %v63_v41 = vld [vmem:[%s1012_s1 + $0xe0] sm:$0x33]  ;;  %vm224_vm1 = vcmask 1041408   ;;  %v746_v48 = vld [vmem:[%s1014_s3 + $0x70] sm:$0xff]   ;;  %v748_v50 = vld [vmem:[%s1014_s3 + $0x78] sm:$0xff]   ;;  %v782_v52 = vmov 0.0  }
  0x2c   :  { %253 = vmatprep.subr.bf16.mxu0 %v723_v36  ;;  %v607_v43 = vcombine.high %v63_v41, %v63_v41  ;;  %v606_v44 = vcombine.low %v63_v41, %v63_v41  ;;  %v31_v45 = vld [vmem:[%s1011_s0] sm:$0xff]  ;;  %v747_v49 = vld [vmem:[%s1014_s3 + $0x30] sm:$0xff]   ;;  %648 = vmatprep.subr.bf16.mxu1 %v746_v48  ;;  %v749_v51 = vld [vmem:[%s1014_s3 + $0x38] sm:$0xff]   ;;  %v66_v54 = vshrl.u32 %v65_v53, 7  ;;  %vm783_vm2 = vmmov 0  }
  0x2d   :  { %v33_v47 = vpack.c.bf16 %v31_v45, %v31_v45  ;;  %649 = vmatpush3.bf16.msra.mxu1 %v747_v49  ;;  %v28_v56 = vld [vmem:[%s1013_s2] sm:$0x3]  ;;  %v751_v7 = vld [vmem:[%s1016_s5 + $0x8] sm:$0xff]   ;;  %v752_v8 = vld [vmem:[%s1016_s5 + $0x10] sm:$0xff]   ;;  %vm562_vm3 = vcmask 244736  }
  0x2e   :  { %v226_v46 = vsel %vm224_vm1, %v606_v44, 0  ;;  %650 = vmatprep.subr.bf16.mxu1 %v748_v50  ;;  %v67_v55 = vsub.s32 0, %v66_v54  ;;  %v71_v57 = vsub.s32 1, %v66_v54  ;;  %v750_v5 = vld [vmem:[%s1016_s5] sm:$0xff]   ;;  %v753_v9 = vld [vmem:[%s1016_s5 + $0x18] sm:$0xff]   ;;  %v755_v11 = vld [vmem:[%s1016_s5 + $0x28] sm:$0xff]  }
  0x2f   :  { %254 = vmatpush1.bf16.msra.mxu0 %v725_v37  ;;  %v754_v10 = vld [vmem:[%s1016_s5 + $0x20] sm:$0xff]   ;;  %v756_v12 = vld [vmem:[%s1016_s5 + $0x30] sm:$0xff]   ;;  %v757_v13 = vld [vmem:[%s1016_s5 + $0x38] sm:$0xff]   ;;  %s784_s5 = smov [#allocation2]  }
  0x30   :  { %255 = vmatprep.subr.bf16.mxu0 %v726_v38  ;;  %v68_v58 = vrot.slane %v28_v56, %v67_v55  ;;  %v72_v59 = vrot.slane %v28_v56, %v71_v57  ;;  %v610_v15 = vld [vmem:[%s1015_s4] ss:$0 sm:$0xff]  ;;  %s570_s1 = sshll.u32 %s784_s5, 4  ;;  %s571_s1 = int_to_ptr.vmem [resolvable:$true] %s570_s1 }
  0x31   :  { %651 = vmatpush3.bf16.msra.mxu1 %v749_v51  ;;  %v627_v23 = vld [vmem:[%s1017_s6] ss:$0 sm:$0xff]  ;;  %s758_s4 = scalar_lea.vmem %s571_s1, 128  ;;  %p763_p1 = scmp.lt.s32.totalorder %s571_s1, %s571_s1 }
  0x32   :  { %667 = vmatprep.subr.bf16.mxu1 %v782_v52  ;;  %p759_p0 = scmp.ne.s32.totalorder %s571_s1, %s758_s4  ;;  %p764_p2 = scmp.lt.s32.totalorder %s758_s4, %s758_s4 }
  0x33   :  { %256 = vmatpush1.bf16.msra.mxu0 %v728_v39 }
  0x34   :  { %257 = vmatprep.subr.bf16.mxu0 %v729_v40  ;;  %p765_p3 = por %p764_p2, %p763_p1 }
  0x36   :  { %p766_p4 = pnand %p765_p3, %p759_p0 }
  0x37   :  { %258 = vmatpush1.bf16.msra.mxu0 %v731_v42 }
  0x38   :  { %608 = vmatprep.subr.msk.bf16.mxu0 %vm224_vm1, %v607_v43 }
  0x3b   :  { %260 = vmatpush1.bf16.msra.mxu0 %v226_v46 }
  0x3e   :  { %264 = vmatmul.mubr.bf16.vlgmr.msra.gmra.mrb[0].mxu0 %v33_v47 }
 0x111   :  { %v265_v60 = vpop.f32.mrb[0].mxu0 }
 0x112   :  { %v266_v61 = vadd.f32 %v265_v60, %v68_v58  ;;  %v267_v62 = vpop.f32.mrb[1].mxu0 }
 0x113   :  { %v268_v63 = vadd.f32 %v267_v62, %v72_v59  ;;  %v269_v0 = vpop.f32.mrb[2].mxu0 }
 0x114   :  { %v272_v1 = vmax.f32 %v266_v61, 0.0  ;;  %v270_v2 = vpop.f32.mrb[3].mxu0 }
 0x115   :  { %v273_v3 = vmax.f32 %v268_v63, 0.0 }
 0x116   :  { %v274_v6 = vpack.c.bf16 %v272_v1, %v272_v1 }
 0x117   :  { %v275_v4 = vpack.c.bf16 %v273_v3, %v273_v3 }
 0x119   :  { %442 = vmatprep.mubr.bf16.mxu1 %v275_v4 }
 0x11a   :  { %443 = vmatmul.mubr.bf16.vlgmr.msra.gmra.mrb[0].mxu1 %v274_v6 }
 0x11b   :  { %668 = vmatpush3.bf16.msra.mxu1 %v750_v5  ;;  %683 = vmatprep.mubr.msk.bf16.mxu1 %vm783_vm2, %v782_v52 }
 0x11c   :  { %669 = vmatprep.subr.bf16.mxu1 %v782_v52 }
 0x11f   :  { %670 = vmatpush3.bf16.msra.mxu1 %v751_v7 }
 0x120   :  { %671 = vmatprep.subr.bf16.mxu1 %v782_v52 }
 0x123   :  { %672 = vmatpush3.bf16.msra.mxu1 %v752_v8 }
 0x124   :  { %673 = vmatprep.subr.bf16.mxu1 %v782_v52 }
 0x127   :  { %674 = vmatpush3.bf16.msra.mxu1 %v753_v9 }
 0x128   :  { %675 = vmatprep.subr.bf16.mxu1 %v782_v52 }
 0x12b   :  { %676 = vmatpush3.bf16.msra.mxu1 %v754_v10 }
 0x12c   :  { %677 = vmatprep.subr.bf16.mxu1 %v782_v52 }
 0x12f   :  { %678 = vmatpush3.bf16.msra.mxu1 %v755_v11 }
 0x130   :  { %679 = vmatprep.subr.bf16.mxu1 %v782_v52 }
 0x133   :  { %680 = vmatpush3.bf16.msra.mxu1 %v756_v12 }
 0x134   :  { %681 = vmatprep.subr.bf16.mxu1 %v782_v52 }
 0x137   :  { %682 = vmatpush3.bf16.msra.mxu1 %v757_v13 }
 0x1ed   :  { %v652_v14 = vpop.f32.mrb[0].mxu1 }
 0x1ee   :  { %v653_v16 = vpop.f32.mrb[1].mxu1 }
 0x1ef   :  { %v654_v17 = vadd.f32 %v653_v16, %v652_v14  ;;  %v655_v18 = vpop.f32.mrb[2].mxu1 }
 0x1f0   :  { %v656_v19 = vpop.f32.mrb[3].mxu1 }
 0x1f1   :  { %v445_v20 = vadd.f32 %v654_v17, %v610_v15 }
 0x1f3   :  { %v450_v21 = vmax.f32 %v445_v20, 0.0 }
 0x1f5   :  { %v451_v22 = vpack.c.bf16 %v450_v21, %v450_v21 }
 0x1f7   :  { %684 = vmatmul.mubr.bf16.vlgmr.msra.gmra.mrb[4].mxu1 %v451_v22 }
 0x2ca   :  { %v556_v24 = vpop.f32.mrb[4].mxu1 }
 0x2cb   :  { %v557_v25 = vadd.f32 %v627_v23, %v556_v24  ;;  %v685_v26 = vpop.f32.mrb[5].mxu1 }
 0x2cc   :  { %v559_v27 = vpop.f32.mrb[6].mxu1 }
 0x2cd   :  { %v686_v28 = vpop.f32.mrb[7].mxu1  ;;  %563 = vst.msk [vmem:[#allocation2] sm:$0xff] %vm562_vm3, %v557_v25 }
 0x2ce   :  { %769 = shalt.err (!%p766_p4)
}
 0x2cf   :  { %s770_s6 = scalar_lea.hbm %s1018_s7, 128 }
 0x2d0   :  { %p771_p5 = scmp.ne.s32.totalorder %s1018_s7, %s770_s6  ;;  %p774_p6 = scmp.lt.u32.totalorder %s770_s6, %s1018_s7 }
 0x2d2   :  { %p776_p7 = pnand %p774_p6, %p771_p5 }
 0x2d4   :  { %779 = shalt.err (!%p776_p7)
}
 0x2d5   :  { %573 = dma.vmem_to_hbm [thread:$0]  %s571_s1, 128, %s1018_s7, [#allocation3]  }
 0x2d6   :  { %780 = dma.done.wait [#allocation3], 128  }
 0x2d7   :  { %781 = vsyncadd [#allocation3], 4294967168 }
 0x2d8   :  { %577 = vsyncpa [#allocation3], 1 }

</bundles_post_ra>
